<compile_context>
chip_gen: v5e
topology: v5e:2x2
jax: 0.10.0
libtpu: 0.0.40
codegen_flags: <defaults>
</compile_context>

<pallas_src>
import functools

import jax
import jax.numpy as jnp
from jax.experimental import pallas as pl
from jax.experimental.pallas import tpu as pltpu


def _round_up(x: int, m: int) -> int:
    return ((x + m - 1) // m) * m


@functools.lru_cache(maxsize=None)
def _vmem_capacity_bytes() -> int:
    """Physical VMEM per TensorCore (128 MiB v5e/v6e, 64 MiB v7x)."""
    try:
        return int(pltpu.get_tpu_info().vmem_capacity_bytes)
    except Exception:
        return 64 << 20  # conservative fallback (v7x per-TC VMEM)


def _pick_batch_tile(B: int, in_p: int, hid_p: int, out_p: int, vmem_cap: int) -> int:
    """Largest multiple-of-16 batch tile that fits VMEM, with >=2 grid steps for large B."""
    # resident, single-buffered weights (bf16) + biases (f32)
    resident = (in_p * hid_p + hid_p * hid_p + hid_p * out_p) * 2 + (2 * hid_p + out_p) * 4
    avail = vmem_cap - resident - (8 << 20)          # headroom for compiler scratch
    per_row = (2 * in_p * 2       # z, double-buffered, bf16
               + 2 * out_p * 2    # out, double-buffered, bf16
               + 2 * hid_p * 2)   # h1 + h2 scratch, bf16
    if avail > per_row * 16:
        max_rows = (avail // per_row) // 16 * 16
    else:
        max_rows = 16
    tile = min(512, max_rows, _round_up(B, 16))
    if B >= 256:
        # ensure >= 2 grid steps so dimension_semantics=("parallel",) can shard
        # batch tiles across both v7x TensorCores (no effect on v5e/v6e)
        tile = min(tile, _round_up((B + 1) // 2, 16))
    return max(16, tile)


def decoder_mlp_kernel(z_ref, w1_ref, b1_ref, w2_ref, b2_ref, w3_ref, b3_ref,
                       o_ref, h1_ref, h2_ref):
    """Fused 3-layer MLP on one batch tile.

    Matmul inputs are bf16 (native MXU rate), accumulation / bias / ReLU in f32
    registers; intermediates are stored to bf16 VMEM scratch and fed straight back
    into the next MXU op. Output is written in bf16.
    """
    z = z_ref[...]                                                    # bf16 [bt, in_p]
    h1 = jnp.dot(z, w1_ref[...], preferred_element_type=jnp.float32) + b1_ref[...]
    h1_ref[...] = jnp.maximum(h1, 0.0).astype(jnp.bfloat16)

    h2 = jnp.dot(h1_ref[...], w2_ref[...],
                 preferred_element_type=jnp.float32) + b2_ref[...]
    h2_ref[...] = jnp.maximum(h2, 0.0).astype(jnp.bfloat16)

    out = jnp.dot(h2_ref[...], w3_ref[...],
                  preferred_element_type=jnp.float32) + b3_ref[...]
    o_ref[...] = out.astype(o_ref.dtype)


def prepare_decoder_params(params):
    """One-time parameter prep (hoisted out of the per-call path).

    Pads feature dims to multiples of 128 (exact: zero padding) and casts weights
    to bf16. Returns (padded_params_dict, dims) where dims is static metadata.
    """
    input_dim, hidden_dim = params["w1"].shape
    output_dim = params["w3"].shape[1]
    in_p = _round_up(input_dim, 128)
    hid_p = _round_up(hidden_dim, 128)
    out_p = _round_up(output_dim, 128)

    bf16 = jnp.bfloat16
    padded = {
        "w1": jnp.zeros((in_p, hid_p), bf16).at[:input_dim, :hidden_dim].set(
            params["w1"].astype(bf16)),
        "w2": jnp.zeros((hid_p, hid_p), bf16).at[:hidden_dim, :hidden_dim].set(
            params["w2"].astype(bf16)),
        "w3": jnp.zeros((hid_p, out_p), bf16).at[:hidden_dim, :output_dim].set(
            params["w3"].astype(bf16)),
        "b1": jnp.zeros((1, hid_p), jnp.float32).at[:, :hidden_dim].set(params["b1"]),
        "b2": jnp.zeros((1, hid_p), jnp.float32).at[:, :hidden_dim].set(params["b2"]),
        "b3": jnp.zeros((1, out_p), jnp.float32).at[:, :output_dim].set(params["b3"]),
    }
    dims = (input_dim, hidden_dim, output_dim)
    return padded, dims


@functools.partial(jax.jit, static_argnames=("dims", "batch_tile"))
def decoder_forward(z, padded_params, *, dims, batch_tile=None):
    """z: [B, input_dim] float32. padded_params from prepare_decoder_params."""
    input_dim, hidden_dim, output_dim = dims
    B = z.shape[0]
    assert z.shape[1] == input_dim

    in_p = padded_params["w1"].shape[0]
    hid_p = padded_params["w1"].shape[1]
    out_p = padded_params["w3"].shape[1]

    vmem_cap = _vmem_capacity_bytes()
    if batch_tile is None:
        batch_tile = _pick_batch_tile(B, in_p, hid_p, out_p, vmem_cap)
    batch_tile = max(16, _round_up(batch_tile, 16))
    B_p = _round_up(B, batch_tile)
    grid = (B_p // batch_tile,)

    # Per-call input prep: only z is padded / cast (weights were prepped once).
    bf16 = jnp.bfloat16
    z_p = jnp.zeros((B_p, in_p), bf16).at[:B, :input_dim].set(z.astype(bf16))

    resident_1buf = pl.Buffered(1)  # weights/biases never change across grid steps
    in_specs = [
        pl.BlockSpec((batch_tile, in_p), lambda i: (i, 0)),        # z tile (pipelined)
        pl.BlockSpec((in_p, hid_p), lambda i: (0, 0), pipeline_mode=resident_1buf),
        pl.BlockSpec((1, hid_p), lambda i: (0, 0), pipeline_mode=resident_1buf),
        pl.BlockSpec((hid_p, hid_p), lambda i: (0, 0), pipeline_mode=resident_1buf),
        pl.BlockSpec((1, hid_p), lambda i: (0, 0), pipeline_mode=resident_1buf),
        pl.BlockSpec((hid_p, out_p), lambda i: (0, 0), pipeline_mode=resident_1buf),
        pl.BlockSpec((1, out_p), lambda i: (0, 0), pipeline_mode=resident_1buf),
    ]
    out_specs = pl.BlockSpec((batch_tile, out_p), lambda i: (i, 0))

    # --- generation-aware VMEM budget (single-buffered weights, bf16 scratch/out) ---
    weight_bytes = (in_p * hid_p + hid_p * hid_p + hid_p * out_p) * 2     # bf16, 1 buf
    bias_bytes = (2 * hid_p + out_p) * 4                                  # f32, 1 buf
    stream_bytes = 2 * batch_tile * in_p * 2 + 2 * batch_tile * out_p * 2  # z + out, 2 bufs
    scratch_bytes = 2 * batch_tile * hid_p * 2                            # h1 + h2, bf16
    est_bytes = weight_bytes + bias_bytes + stream_bytes + scratch_bytes
    vmem_limit = min(int(est_bytes * 1.25) + (4 << 20), vmem_cap)
    vmem_limit = max(vmem_limit, min(32 << 20, vmem_cap))

    flops = 2 * B_p * (in_p * hid_p + hid_p * hid_p + hid_p * out_p)
    bytes_accessed = (B_p * in_p * 2 + B_p * out_p * 2
                      + (in_p * hid_p + hid_p * hid_p + hid_p * out_p) * 2
                      + (2 * hid_p + out_p) * 4)

    out_padded = pl.pallas_call(
        decoder_mlp_kernel,
        out_shape=jax.ShapeDtypeStruct((B_p, out_p), jnp.bfloat16),
        grid_spec=pltpu.PrefetchScalarGridSpec(
            num_scalar_prefetch=0,
            grid=grid,
            in_specs=in_specs,
            out_specs=out_specs,
            scratch_shapes=[
                pltpu.VMEM((batch_tile, hid_p), jnp.bfloat16),   # h1
                pltpu.VMEM((batch_tile, hid_p), jnp.bfloat16),   # h2
            ],
        ),
        compiler_params=pltpu.CompilerParams(
            dimension_semantics=("parallel",),   # batch tiles shard across TCs (v7x)
            vmem_limit_bytes=vmem_limit,
        ),
        cost_estimate=pl.CostEstimate(
            flops=flops, transcendentals=0, bytes_accessed=bytes_accessed),
    )(
        z_p,
        padded_params["w1"], padded_params["b1"],
        padded_params["w2"], padded_params["b2"],
        padded_params["w3"], padded_params["b3"],
    )

    # Match the original module's f32 output dtype (cheap wrapper-side upcast).
    return out_padded[:B, :output_dim].astype(jnp.float32)


def init_params(key, input_dim, hidden_dim, output_dim):
    """Deterministic PyTorch-style init: U(-1/sqrt(fan_in), 1/sqrt(fan_in)).
    Weights stored transposed ([in, out]) so y = x @ W + b == PyTorch x @ W.T + b."""
    ks = jax.random.split(key, 6)

    def lin(kw, kb, fan_in, fan_out):
        bound = 1.0 / jnp.sqrt(float(fan_in))
        w = jax.random.uniform(kw, (fan_in, fan_out), jnp.float32, -bound, bound)
        b = jax.random.uniform(kb, (1, fan_out), jnp.float32, -bound, bound)
        return w, b

    w1, b1 = lin(ks[0], ks[1], input_dim, hidden_dim)
    w2, b2 = lin(ks[2], ks[3], hidden_dim, hidden_dim)
    w3, b3 = lin(ks[4], ks[5], hidden_dim, output_dim)
    return {"w1": w1, "b1": b1, "w2": w2, "b2": b2, "w3": w3, "b3": b3}


def decoder_ref_f32(z, p):
    h1 = jnp.maximum(z @ p["w1"] + p["b1"], 0.0)
    h2 = jnp.maximum(h1 @ p["w2"] + p["b2"], 0.0)
    return h2 @ p["w3"] + p["b3"]


def decoder_ref_bf16(z, p):
    """Reference mirroring the kernel's bf16-input / f32-accumulate matmuls."""
    def mm(x, w):
        return jnp.dot(x.astype(jnp.bfloat16), w.astype(jnp.bfloat16),
                       preferred_element_type=jnp.float32)
    h1 = jnp.maximum(mm(z, p["w1"]) + p["b1"], 0.0)
    h2 = jnp.maximum(mm(h1, p["w2"]) + p["b2"], 0.0)
    return mm(h2, p["w3"]) + p["b3"]


if __name__ == "__main__":
    key = jax.random.PRNGKey(0)
    k_z, k_p = jax.random.split(key)

    B, input_dim, hidden_dim, output_dim = 8, 16, 32, 16
    z = jax.random.normal(k_z, (B, input_dim), jnp.float32)
    params = init_params(k_p, input_dim, hidden_dim, output_dim)

    # One-time parameter prep (padding + bf16 cast hoisted out of the forward path).
    padded_params, dims = prepare_decoder_params(params)

    out = decoder_forward(z, padded_params, dims=dims)
    out = jax.block_until_ready(out)
    assert out.shape == (B, output_dim)
    assert out.dtype == jnp.float32

    ref_bf16 = decoder_ref_bf16(z, params)
    ref_f32 = decoder_ref_f32(z, params)
    assert jnp.allclose(out, ref_bf16, atol=2e-2, rtol=2e-2), "mismatch vs bf16 reference"
    assert jnp.allclose(out, ref_f32, atol=5e-2, rtol=5e-2), "mismatch vs f32 reference"

    print("KERNEL_OK")
</pallas_src>

<mosaic_0001>
module attributes {stable_mosaic.version = 11 : i64} {
  func.func @decoder_mlp_kernel(%arg0: i32, %arg1: memref<16x128xbf16, #tpu.memory_space<vmem>>, %arg2: memref<128x128xbf16, #tpu.memory_space<vmem>>, %arg3: memref<1x128xf32, #tpu.memory_space<vmem>>, %arg4: memref<128x128xbf16, #tpu.memory_space<vmem>>, %arg5: memref<1x128xf32, #tpu.memory_space<vmem>>, %arg6: memref<128x128xbf16, #tpu.memory_space<vmem>>, %arg7: memref<1x128xf32, #tpu.memory_space<vmem>>, %arg8: memref<16x128xbf16, #tpu.memory_space<vmem>>, %arg9: memref<16x128xbf16, #tpu.memory_space<vmem>>, %arg10: memref<16x128xbf16, #tpu.memory_space<vmem>>) attributes {dimension_semantics = [#tpu.dimension_semantics<parallel>], iteration_bounds = array<i64: 1>, scalar_prefetch = 0 : i64, scratch_operands = 2 : i64, tpu.core_type = #tpu.core_type<tc>, window_params = [{transform_indices = @transform_0, window_bounds = array<i64: 16, 128>}, {pipeline_mode = #tpu.pipeline_mode<synchronous>, transform_indices = @transform_1, window_bounds = array<i64: 128, 128>}, {pipeline_mode = #tpu.pipeline_mode<synchronous>, transform_indices = @transform_2, window_bounds = array<i64: 1, 128>}, {pipeline_mode = #tpu.pipeline_mode<synchronous>, transform_indices = @transform_3, window_bounds = array<i64: 128, 128>}, {pipeline_mode = #tpu.pipeline_mode<synchronous>, transform_indices = @transform_4, window_bounds = array<i64: 1, 128>}, {pipeline_mode = #tpu.pipeline_mode<synchronous>, transform_indices = @transform_5, window_bounds = array<i64: 128, 128>}, {pipeline_mode = #tpu.pipeline_mode<synchronous>, transform_indices = @transform_6, window_bounds = array<i64: 1, 128>}, {transform_indices = @transform_7, window_bounds = array<i64: 16, 128>}]} {
    %c0 = arith.constant 0 : index
    %c0_0 = arith.constant 0 : index
    %0 = vector.load %arg1[%c0, %c0_0] : memref<16x128xbf16, #tpu.memory_space<vmem>>, vector<16x128xbf16>
    %c0_1 = arith.constant 0 : index
    %c0_2 = arith.constant 0 : index
    %1 = vector.load %arg2[%c0_1, %c0_2] : memref<128x128xbf16, #tpu.memory_space<vmem>>, vector<128x128xbf16>
    %cst = arith.constant dense<0.000000e+00> : vector<16x128xf32>
    %2 = tpu.matmul %0, %1, %cst {dimension_numbers = #tpu.dot_dimension_numbers<[1], [0], [0], [1], [0, 0, 1, 1], [], []>} : vector<16x128xbf16>, vector<128x128xbf16>, vector<16x128xf32> -> vector<16x128xf32>
    %c0_3 = arith.constant 0 : index
    %c0_4 = arith.constant 0 : index
    %3 = vector.load %arg3[%c0_3, %c0_4] : memref<1x128xf32, #tpu.memory_space<vmem>>, vector<1x128xf32>
    %4 = vector.broadcast %3 : vector<1x128xf32> to vector<16x128xf32>
    %5 = arith.addf %2, %4 : vector<16x128xf32>
    %cst_5 = arith.constant 0.000000e+00 : f32
    %6 = vector.broadcast %cst_5 : f32 to vector<16x128xf32>
    %7 = arith.maximumf %5, %6 : vector<16x128xf32>
    %8 = arith.truncf %7 : vector<16x128xf32> to vector<16x128xbf16>
    %c0_6 = arith.constant 0 : index
    %c0_7 = arith.constant 0 : index
    %9 = vector.load %arg9[%c0_6, %c0_7] : memref<16x128xbf16, #tpu.memory_space<vmem>>, vector<16x128xbf16>
    tpu.vector_store %arg9[%c0_6, %c0_7], %8 {strides = array<i32>} : memref<16x128xbf16, #tpu.memory_space<vmem>>, vector<16x128xbf16>,
    %c0_8 = arith.constant 0 : index
    %c0_9 = arith.constant 0 : index
    %10 = vector.load %arg9[%c0_8, %c0_9] : memref<16x128xbf16, #tpu.memory_space<vmem>>, vector<16x128xbf16>
    %c0_10 = arith.constant 0 : index
    %c0_11 = arith.constant 0 : index
    %11 = vector.load %arg4[%c0_10, %c0_11] : memref<128x128xbf16, #tpu.memory_space<vmem>>, vector<128x128xbf16>
    %cst_12 = arith.constant dense<0.000000e+00> : vector<16x128xf32>
    %12 = tpu.matmul %10, %11, %cst_12 {dimension_numbers = #tpu.dot_dimension_numbers<[1], [0], [0], [1], [0, 0, 1, 1], [], []>} : vector<16x128xbf16>, vector<128x128xbf16>, vector<16x128xf32> -> vector<16x128xf32>
    %c0_13 = arith.constant 0 : index
    %c0_14 = arith.constant 0 : index
    %13 = vector.load %arg5[%c0_13, %c0_14] : memref<1x128xf32, #tpu.memory_space<vmem>>, vector<1x128xf32>
    %14 = vector.broadcast %13 : vector<1x128xf32> to vector<16x128xf32>
    %15 = arith.addf %12, %14 : vector<16x128xf32>
    %cst_15 = arith.constant 0.000000e+00 : f32
    %16 = vector.broadcast %cst_15 : f32 to vector<16x128xf32>
    %17 = arith.maximumf %15, %16 : vector<16x128xf32>
    %18 = arith.truncf %17 : vector<16x128xf32> to vector<16x128xbf16>
    %c0_16 = arith.constant 0 : index
    %c0_17 = arith.constant 0 : index
    %19 = vector.load %arg10[%c0_16, %c0_17] : memref<16x128xbf16, #tpu.memory_space<vmem>>, vector<16x128xbf16>
    tpu.vector_store %arg10[%c0_16, %c0_17], %18 {strides = array<i32>} : memref<16x128xbf16, #tpu.memory_space<vmem>>, vector<16x128xbf16>,
    %c0_18 = arith.constant 0 : index
    %c0_19 = arith.constant 0 : index
    %20 = vector.load %arg10[%c0_18, %c0_19] : memref<16x128xbf16, #tpu.memory_space<vmem>>, vector<16x128xbf16>
    %c0_20 = arith.constant 0 : index
    %c0_21 = arith.constant 0 : index
    %21 = vector.load %arg6[%c0_20, %c0_21] : memref<128x128xbf16, #tpu.memory_space<vmem>>, vector<128x128xbf16>
    %cst_22 = arith.constant dense<0.000000e+00> : vector<16x128xf32>
    %22 = tpu.matmul %20, %21, %cst_22 {dimension_numbers = #tpu.dot_dimension_numbers<[1], [0], [0], [1], [0, 0, 1, 1], [], []>} : vector<16x128xbf16>, vector<128x128xbf16>, vector<16x128xf32> -> vector<16x128xf32>
    %c0_23 = arith.constant 0 : index
    %c0_24 = arith.constant 0 : index
    %23 = vector.load %arg7[%c0_23, %c0_24] : memref<1x128xf32, #tpu.memory_space<vmem>>, vector<1x128xf32>
    %24 = vector.broadcast %23 : vector<1x128xf32> to vector<16x128xf32>
    %25 = arith.addf %22, %24 : vector<16x128xf32>
    %26 = arith.truncf %25 : vector<16x128xf32> to vector<16x128xbf16>
    %c0_25 = arith.constant 0 : index
    %c0_26 = arith.constant 0 : index
    %27 = vector.load %arg8[%c0_25, %c0_26] : memref<16x128xbf16, #tpu.memory_space<vmem>>, vector<16x128xbf16>
    tpu.vector_store %arg8[%c0_25, %c0_26], %26 {strides = array<i32>} : memref<16x128xbf16, #tpu.memory_space<vmem>>, vector<16x128xbf16>,
    return
  }
  func.func @transform_0(%arg0: i32) -> (i32, i32) {
    %c0_i32 = arith.constant 0 : i32
    %c0_i32_0 = arith.constant 0 : i32
    return %arg0, %c0_i32 : i32, i32
  }
  func.func @transform_1(%arg0: i32) -> (i32, i32) {
    %c0_i32 = arith.constant 0 : i32
    %c0_i32_0 = arith.constant 0 : i32
    %c0_i32_1 = arith.constant 0 : i32
    return %c0_i32, %c0_i32_0 : i32, i32
  }
  func.func @transform_2(%arg0: i32) -> (i32, i32) {
    %c0_i32 = arith.constant 0 : i32
    %c0_i32_0 = arith.constant 0 : i32
    %c0_i32_1 = arith.constant 0 : i32
    return %c0_i32, %c0_i32_0 : i32, i32
  }
  func.func @transform_3(%arg0: i32) -> (i32, i32) {
    %c0_i32 = arith.constant 0 : i32
    %c0_i32_0 = arith.constant 0 : i32
    %c0_i32_1 = arith.constant 0 : i32
    return %c0_i32, %c0_i32_0 : i32, i32
  }
  func.func @transform_4(%arg0: i32) -> (i32, i32) {
    %c0_i32 = arith.constant 0 : i32
    %c0_i32_0 = arith.constant 0 : i32
    %c0_i32_1 = arith.constant 0 : i32
    return %c0_i32, %c0_i32_0 : i32, i32
  }
  func.func @transform_5(%arg0: i32) -> (i32, i32) {
    %c0_i32 = arith.constant 0 : i32
    %c0_i32_0 = arith.constant 0 : i32
    %c0_i32_1 = arith.constant 0 : i32
    return %c0_i32, %c0_i32_0 : i32, i32
  }
  func.func @transform_6(%arg0: i32) -> (i32, i32) {
    %c0_i32 = arith.constant 0 : i32
    %c0_i32_0 = arith.constant 0 : i32
    %c0_i32_1 = arith.constant 0 : i32
    return %c0_i32, %c0_i32_0 : i32, i32
  }
  func.func @transform_7(%arg0: i32) -> (i32, i32) {
    %c0_i32 = arith.constant 0 : i32
    %c0_i32_0 = arith.constant 0 : i32
    return %arg0, %c0_i32 : i32, i32
  }
}

</mosaic_0001>

<bundles_post_ra>
// kernel: decoder_forward.1
= control target key start
LH: loop header
LB: loop body
LE: loop exit
PB: predicated region body
PF: predicated region fallthrough
CT: control target
= control target key end

     0   :  { %12 = vsyncpa [#allocation5], 0  ;;  %s668_s0 = inlined_call_operand.vmem [shape: bf16[16,128], index: 0, kind: input, shape index: {}]   ;;  %s669_s1 = inlined_call_operand.hbm [shape: bf16[128,128], index: 1, kind: input, shape index: {}]   ;;  %s670_s2 = inlined_call_operand.vmem [shape: f32[1,128], index: 2, kind: input, shape index: {}]   ;;  %s671_s3 = inlined_call_operand.hbm [shape: bf16[128,128], index: 3, kind: input, shape index: {}]   ;;  %s672_s4 = inlined_call_operand.vmem [shape: f32[1,128], index: 4, kind: input, shape index: {}]   ;;  %s673_s5 = inlined_call_operand.hbm [shape: bf16[128,128], index: 5, kind: input, shape index: {}]   ;;  %s674_s6 = inlined_call_operand.vmem [shape: f32[1,128], index: 6, kind: input, shape index: {}]   ;;  %s675_s7 = inlined_call_operand.vmem [shape: bf16[16,128], index: 7, kind: output, shape index: {}]  }
   0x1   :  { %13 = vsyncpa [#allocation7], 0  ;;  %s35_s26 = sshll.u32 %s671_s3, 4  ;;  %s599_s27 = smov [#allocation6]   ;;  %s36_s26 = int_to_ptr.hbm [resolvable:$true] %s35_s26 }
   0x2   :  { %s37_s28 = sshll.u32 %s599_s27, 4  ;;  %s20_s8 = sshll.u32 %s669_s1, 4  ;;  %s38_s28 = int_to_ptr.vmem [resolvable:$true] %s37_s28  ;;  %s21_s8 = int_to_ptr.hbm [resolvable:$true] %s20_s8 }
   0x3   :  { %s600_s9 = smov 64   ;;  %s601_s10 = smov 4  }
   0x4   :  { %43 = dma.hbm_to_vmem [thread:$0]  %s36_s26, 1024, %s38_s28, [#allocation7], %s600_s9, %s600_s9, %s601_s10  }
   0x5   :  { %s602_s11 = smov [#allocation4]   ;;  %s50_s15 = sshll.u32 %s673_s5, 4  ;;  %s51_s15 = int_to_ptr.hbm [resolvable:$true] %s50_s15 }
   0x6   :  { %s22_s12 = sshll.u32 %s602_s11, 4  ;;  %s603_s3 = smov [#allocation8]   ;;  %s23_s12 = int_to_ptr.vmem [resolvable:$true] %s22_s12 }
   0x7   :  { %28 = dma.hbm_to_vmem [thread:$0]  %s21_s8, 1024, %s23_s12, [#allocation5], %s600_s9, %s600_s9, %s601_s10  }
   0x8   :  { %s52_s16 = sshll.u32 %s603_s3, 4  ;;  %s53_s16 = int_to_ptr.vmem [resolvable:$true] %s52_s16 }
   0x9   :  { %58 = dma.hbm_to_vmem [thread:$0]  %s51_s15, 1024, %s53_s16, [#allocation7], %s600_s9, %s600_s9, %s601_s10  }
   0xa   :  { %595 = dma.done.wait [#allocation5], 1024  }
   0xb   :  { %596 = vsyncadd [#allocation5], 4294966272 }
   0xc   :  { %597 = dma.done.wait [#allocation7], 2048  }
   0xd   :  { %598 = vsyncadd [#allocation7], 4294965248  ;;  %v481_v0 = vld [vmem:[#allocation4 + $0x38] sm:$0xff]  ;;  %v480_v1 = vld [vmem:[#allocation4 + $0x30] sm:$0xff] }
   0xe   :  { %149 = vmatpush.bf16.msra.mxu0 %v481_v0  ;;  %v490_v2 = vld [vmem:[#allocation6 + $0x38] sm:$0xff]  ;;  %v489_v3 = vld [vmem:[#allocation6 + $0x30] sm:$0xff]  ;;  %v479_v4 = vld [vmem:[#allocation4 + $0x28] sm:$0xff] }
   0xf   :  { %245 = vmatpush.bf16.msra.mxu1 %v490_v2  ;;  %v478_v5 = vld [vmem:[#allocation4 + $0x20] sm:$0xff]  ;;  %v477_v6 = vld [vmem:[#allocation4 + $0x18] sm:$0xff]  ;;  %v476_v7 = vld [vmem:[#allocation4 + $0x10] sm:$0xff] }
  0x10   :  { %v475_v8 = vld [vmem:[#allocation4 + $0x8] sm:$0xff]  ;;  %v474_v9 = vld [vmem:[#allocation4] sm:$0xff]  ;;  %v473_v10 = vld [vmem:[%s668_s0] sm:$0xff] }
  0x11   :  { %v488_v11 = vld [vmem:[#allocation6 + $0x28] sm:$0xff]  ;;  %v487_v12 = vld [vmem:[#allocation6 + $0x20] sm:$0xff]  ;;  %v486_v13 = vld [vmem:[#allocation6 + $0x18] sm:$0xff] }
  0x12   :  { %150 = vmatpush.bf16.msra.mxu0 %v480_v1  ;;  %v485_v14 = vld [vmem:[#allocation6 + $0x10] sm:$0xff]  ;;  %v484_v15 = vld [vmem:[#allocation6 + $0x8] sm:$0xff]  ;;  %v483_v16 = vld [vmem:[#allocation6] sm:$0xff] }
  0x13   :  { %246 = vmatpush.bf16.msra.mxu1 %v489_v3  ;;  %v499_v17 = vld [vmem:[#allocation8 + $0x38] sm:$0xff]  ;;  %v498_v18 = vld [vmem:[#allocation8 + $0x30] sm:$0xff]  ;;  %v497_v28 = vld [vmem:[#allocation8 + $0x28] sm:$0xff] }
  0x14   :  { %341 = vmatpush.bf16.msra.mxu2 %v499_v17  ;;  %v520_v20 = vld [vmem:[%s670_s2] ss:$0 sm:$0xff]  ;;  %v496_v29 = vld [vmem:[#allocation8 + $0x20] sm:$0xff]  ;;  %v495_v30 = vld [vmem:[#allocation8 + $0x18] sm:$0xff] }
  0x15   :  { %v494_v31 = vld [vmem:[#allocation8 + $0x10] sm:$0xff]  ;;  %v493_v32 = vld [vmem:[#allocation8 + $0x8] sm:$0xff]  ;;  %v492_v33 = vld [vmem:[#allocation8] sm:$0xff] }
  0x16   :  { %151 = vmatpush.bf16.msra.mxu0 %v479_v4  ;;  %v521_v35 = vld [vmem:[%s672_s4] ss:$0 sm:$0xff] }
  0x17   :  { %247 = vmatpush.bf16.msra.mxu1 %v488_v11  ;;  %v522_v44 = vld [vmem:[%s674_s6] ss:$0 sm:$0xff] }
  0x18   :  { %342 = vmatpush.bf16.msra.mxu2 %v498_v18 }
  0x1a   :  { %152 = vmatpush.bf16.msra.mxu0 %v478_v5 }
  0x1b   :  { %248 = vmatpush.bf16.msra.mxu1 %v487_v12 }
  0x1c   :  { %343 = vmatpush.bf16.msra.mxu2 %v497_v28 }
  0x1e   :  { %153 = vmatpush.bf16.msra.mxu0 %v477_v6 }
  0x1f   :  { %249 = vmatpush.bf16.msra.mxu1 %v486_v13 }
  0x20   :  { %344 = vmatpush.bf16.msra.mxu2 %v496_v29 }
  0x22   :  { %154 = vmatpush.bf16.msra.mxu0 %v476_v7 }
  0x23   :  { %250 = vmatpush.bf16.msra.mxu1 %v485_v14 }
  0x24   :  { %345 = vmatpush.bf16.msra.mxu2 %v495_v30 }
  0x26   :  { %155 = vmatpush.bf16.msra.mxu0 %v475_v8 }
  0x27   :  { %251 = vmatpush.bf16.msra.mxu1 %v484_v15 }
  0x28   :  { %346 = vmatpush.bf16.msra.mxu2 %v494_v31 }
  0x2a   :  { %156 = vmatpush.bf16.msra.mxu0 %v474_v9 }
  0x2b   :  { %252 = vmatpush.bf16.msra.mxu1 %v483_v16 }
  0x2c   :  { %347 = vmatpush.bf16.msra.mxu2 %v493_v32 }
  0x2d   :  { %157 = vmatmul.bf16.vlgmr.msra.gmra.mxu0 %v473_v10 }
  0x30   :  { %348 = vmatpush.bf16.msra.mxu2 %v492_v33 }
  0xaa   :  { %v158_v19 = vpop.f32.mrf.mxu0 }
  0xab   :  { %v159_v21 = vadd.f32 %v520_v20, %v158_v19 }
  0xad   :  { %v163_v24 = vmax.f32 %v159_v21, 0.0 }
  0xb2   :  { %v160_v22 = vpop.f32.mrf.mxu0 }
  0xb3   :  { %v161_v23 = vadd.f32 %v520_v20, %v160_v22 }
  0xb5   :  { %v164_v25 = vmax.f32 %v161_v23, 0.0 }
  0xb7   :  { %v503_v26 = vpack.c.bf16 %v164_v25, %v163_v24 }
  0xb9   :  { %504 = vst [vmem:[#allocation2] sm:$0xff] %v503_v26  }
  0xc0   :  { %v482_v27 = vld [vmem:[#allocation2] sm:$0xff] }
  0xc1   :  { %253 = vmatmul.bf16.vlgmr.msra.gmra.mxu1 %v482_v27 }
 0x13e   :  { %v254_v34 = vpop.f32.mrf.mxu1 }
 0x13f   :  { %v255_v36 = vadd.f32 %v521_v35, %v254_v34 }
 0x141   :  { %v259_v39 = vmax.f32 %v255_v36, 0.0 }
 0x146   :  { %v256_v37 = vpop.f32.mrf.mxu1 }
 0x147   :  { %v257_v38 = vadd.f32 %v521_v35, %v256_v37 }
 0x149   :  { %v260_v40 = vmax.f32 %v257_v38, 0.0 }
 0x14b   :  { %v508_v41 = vpack.c.bf16 %v260_v40, %v259_v39 }
 0x14d   :  { %509 = vst [vmem:[#allocation3] sm:$0xff] %v508_v41  }
 0x154   :  { %v491_v42 = vld [vmem:[#allocation3] sm:$0xff] }
 0x155   :  { %349 = vmatmul.bf16.vlgmr.msra.gmra.mxu2 %v491_v42 }
 0x1d8   :  { %v350_v43 = vpop.f32.mrf.mxu2 }
 0x1d9   :  { %v351_v46 = vadd.f32 %v522_v44, %v350_v43 }
 0x1e0   :  { %v352_v45 = vpop.f32.mrf.mxu2 }
 0x1e1   :  { %v353_v47 = vadd.f32 %v522_v44, %v352_v45 }
 0x1e3   :  { %v513_v48 = vpack.c.bf16 %v353_v47, %v351_v46 }
 0x1e5   :  { %514 = vst [vmem:[%s675_s7] sm:$0xff] %v513_v48  }
 0x1e6   :  { %363 = vsyncpa [#allocation5], 1 }
 0x1e7   :  { %364 = vsyncpa [#allocation7], 1 }

</bundles_post_ra>
